<compile_context>
chip_gen: v7x
topology: tpu7x:2x2x1
jax: 0.10.0
libtpu: 0.0.40
codegen_flags: <defaults>
</compile_context>

<pallas_src>
import functools

import jax
import jax.numpy as jnp
import numpy as np
from jax.experimental import pallas as pl
from jax.experimental.pallas import tpu as pltpu


def _ce_iou_partials_kernel(pred_ref, targ_ref, out_ref, *, t_pix, hw, need_mask):
    """Per-(batch, pixel-block) partial sums.

    Writes lanes 0..2 of one (8, 128) vreg:
      lane 0: sum(t * log_softmax(x))   (negated outside)
      lane 1: sum(sigmoid(x) * t)       (intersection)
      lane 2: sum(sigmoid(x) + t)       (pred-sum + target-sum)
    """
    p = pl.program_id(1)

    x = pred_ref[0].astype(jnp.float32)   # (C, t_pix) logits, pixels on lanes
    t = targ_ref[0].astype(jnp.float32)   # (C, t_pix) targets

    # Numerically-stable log-softmax over the (small) class / sublane axis.
    m = jnp.max(x, axis=0, keepdims=True)           # (1, t_pix)
    e = jnp.exp(x - m)                               # (C, t_pix)  -- only full-tile exp
    se = jnp.sum(e, axis=0, keepdims=True)           # (1, t_pix)
    lse = m + jnp.log(se)                             # (1, t_pix)
    logp = x - lse                                    # (C, t_pix)

    # sigmoid(x) = e / (e + exp(-m)): reuse e, avoid a second full-tile exp.
    em = jnp.exp(-m)                                  # (1, t_pix)
    s = e * pl.reciprocal(e + em, approx=True)        # (C, t_pix)

    ce_el = t * logp
    inter_el = s * t
    union_el = s + t

    if need_mask:
        lane = jax.lax.broadcasted_iota(jnp.int32, (1, t_pix), 1)
        valid = (p * t_pix + lane) < hw               # (1, t_pix), broadcasts over C
        ce_el = jnp.where(valid, ce_el, 0.0)
        inter_el = jnp.where(valid, inter_el, 0.0)
        union_el = jnp.where(valid, union_el, 0.0)

    ce_p = jnp.sum(ce_el)
    i_p = jnp.sum(inter_el)
    u_p = jnp.sum(union_el)

    lane_id = jax.lax.broadcasted_iota(jnp.int32, (8, 128), 1)
    out_vec = jnp.where(lane_id == 0, ce_p,
              jnp.where(lane_id == 1, i_p,
              jnp.where(lane_id == 2, u_p, 0.0)))
    out_ref[0, 0, :, :] = out_vec


def ce_iou_loss(predictions, targets, alpha=0.5, smooth=1.0, max_tile_pixels=8192):
    """predictions/targets: NCHW float arrays.  Returns scalar combined loss (float32)."""
    n, c, h, w = predictions.shape
    assert targets.shape == predictions.shape
    hw = h * w

    # Free reshapes: NCHW row-major => (N, C, H*W) is the same memory layout.
    pred3 = predictions.reshape(n, c, hw)
    targ3 = targets.reshape(n, c, hw)

    if hw % 128 == 0:
        t_pix = min(max_tile_pixels, hw)   # multiple of 128 (max_tile_pixels is 8192)
    else:
        # TODO(synk): odd H*W falls back to one full-width tile per batch item.
        t_pix = hw
    nb = pl.cdiv(hw, t_pix)
    need_mask = (hw % t_pix) != 0

    kernel = functools.partial(
        _ce_iou_partials_kernel, t_pix=t_pix, hw=hw, need_mask=need_mask)

    partials = pl.pallas_call(
        kernel,
        out_shape=jax.ShapeDtypeStruct((n, nb, 8, 128), jnp.float32),
        grid_spec=pltpu.PrefetchScalarGridSpec(
            num_scalar_prefetch=0,
            grid=(n, nb),
            in_specs=[
                pl.BlockSpec((1, c, t_pix), lambda i, p: (i, 0, p)),
                pl.BlockSpec((1, c, t_pix), lambda i, p: (i, 0, p)),
            ],
            out_specs=pl.BlockSpec((1, 1, 8, 128), lambda i, p: (i, p, 0, 0)),
        ),
        compiler_params=pltpu.CompilerParams(
            dimension_semantics=("parallel", "parallel"),
        ),
    )(pred3, targ3)

    # Tiny final combine in plain JAX (a few hundred floats).
    sums = jnp.sum(partials[:, :, 0, :], axis=(0, 1))     # (128,), lanes 0..2 used
    ce_sum = -sums[0]
    inter = sums[1]
    union = sums[2] - inter
    ce_mean = ce_sum / jnp.float32(n * hw)
    iou_loss = 1.0 - (inter + smooth) / (union + smooth)
    return (alpha * ce_mean + (1.0 - alpha) * iou_loss).astype(jnp.float32)


def _reference(predictions, targets, alpha=0.5, smooth=1.0):
    """Pure-JAX reference matching PyTorch semantics."""
    n, c, h, w = predictions.shape
    logits = jnp.transpose(predictions, (0, 2, 3, 1)).reshape(-1, c).astype(jnp.float32)
    t = jnp.transpose(targets, (0, 2, 3, 1)).reshape(-1, c).astype(jnp.float32)
    logp = jax.nn.log_softmax(logits, axis=-1)
    ce = -jnp.mean(jnp.sum(t * logp, axis=-1))
    s = jax.nn.sigmoid(logits).reshape(-1)
    tf = t.reshape(-1)
    inter = jnp.sum(s * tf)
    union = jnp.sum(s) + jnp.sum(tf) - inter
    iou_loss = 1.0 - (inter + smooth) / (union + smooth)
    return alpha * ce + (1.0 - alpha) * iou_loss


if __name__ == "__main__":
    key = jax.random.PRNGKey(0)
    N, C, H, W = 2, 4, 16, 16

    k1, k2 = jax.random.split(key)
    predictions = jax.random.normal(k1, (N, C, H, W), dtype=jnp.float32)
    # Integer class labels -> one-hot targets (same CE value as PyTorch index targets).
    labels = jax.random.randint(k2, (N, H, W), 0, C)
    targets = jax.nn.one_hot(labels, C, dtype=jnp.float32)          # (N, H, W, C)
    targets = jnp.transpose(targets, (0, 3, 1, 2))                  # NCHW

    loss = ce_iou_loss(predictions, targets, alpha=0.5)
    loss = jax.block_until_ready(loss)

    ref = jax.block_until_ready(_reference(predictions, targets, alpha=0.5))
    # Tolerance relaxed to 1e-3 to account for the approximate EUP reciprocal in sigmoid.
    assert np.allclose(np.asarray(loss), np.asarray(ref), rtol=1e-3, atol=1e-3), (
        float(loss), float(ref))

    print("KERNEL_OK")
</pallas_src>

<mosaic_0001>
module attributes {stable_mosaic.version = 11 : i64} {
  func.func @_ce_iou_partials_kernel(%arg0: i32, %arg1: i32, %arg2: memref<1x4x256xf32, #tpu.memory_space<vmem>>, %arg3: memref<1x4x256xf32, #tpu.memory_space<vmem>>, %arg4: memref<1x1x8x128xf32, #tpu.memory_space<vmem>>) attributes {dimension_semantics = [#tpu.dimension_semantics<parallel>, #tpu.dimension_semantics<parallel>], iteration_bounds = array<i64: 2, 1>, scalar_prefetch = 0 : i64, scratch_operands = 0 : i64, tpu.core_type = #tpu.core_type<tc>, window_params = [{transform_indices = @transform_0, window_bounds = array<i64: 1, 4, 256>}, {transform_indices = @transform_1, window_bounds = array<i64: 1, 4, 256>}, {transform_indices = @transform_2, window_bounds = array<i64: 1, 1, 8, 128>}]} {
    %c0 = arith.constant 0 : index
    %c0_0 = arith.constant 0 : index
    %c0_1 = arith.constant 0 : index
    %0 = vector.load %arg2[%c0, %c0_0, %c0_1] : memref<1x4x256xf32, #tpu.memory_space<vmem>>, vector<1x4x256xf32>
    %1 = vector.shape_cast %0 : vector<1x4x256xf32> to vector<4x256xf32>
    %c0_2 = arith.constant 0 : index
    %c0_3 = arith.constant 0 : index
    %c0_4 = arith.constant 0 : index
    %2 = vector.load %arg3[%c0_2, %c0_3, %c0_4] : memref<1x4x256xf32, #tpu.memory_space<vmem>>, vector<1x4x256xf32>
    %3 = vector.shape_cast %2 : vector<1x4x256xf32> to vector<4x256xf32>
    %cst = arith.constant dense<0xFF800000> : vector<256xf32>
    %4 = vector.multi_reduction <maximumf>, %1, %cst [0] : vector<4x256xf32> to vector<256xf32>
    %5 = vector.shape_cast %4 : vector<256xf32> to vector<1x256xf32>
    %6 = vector.broadcast %5 : vector<1x256xf32> to vector<4x256xf32>
    %7 = arith.subf %1, %6 : vector<4x256xf32>
    %8 = math.exp %7 : vector<4x256xf32>
    %cst_5 = arith.constant dense<0.000000e+00> : vector<256xf32>
    %9 = vector.multi_reduction <add>, %8, %cst_5 [0] : vector<4x256xf32> to vector<256xf32>
    %10 = vector.shape_cast %9 : vector<256xf32> to vector<1x256xf32>
    %11 = math.log %10 : vector<1x256xf32>
    %12 = arith.addf %5, %11 : vector<1x256xf32>
    %13 = vector.broadcast %12 : vector<1x256xf32> to vector<4x256xf32>
    %14 = arith.subf %1, %13 : vector<4x256xf32>
    %cst_6 = arith.constant 0.000000e+00 : f32
    %15 = vector.broadcast %cst_6 : f32 to vector<1x256xf32>
    %16 = arith.subf %15, %5 : vector<1x256xf32>
    %17 = math.exp %16 : vector<1x256xf32>
    %18 = vector.broadcast %17 : vector<1x256xf32> to vector<4x256xf32>
    %19 = arith.addf %8, %18 : vector<4x256xf32>
    %20 = tpu.reciprocal %19 {approx = true} : vector<4x256xf32> -> vector<4x256xf32>
    %21 = arith.mulf %8, %20 : vector<4x256xf32>
    %22 = arith.mulf %3, %14 : vector<4x256xf32>
    %23 = arith.mulf %21, %3 : vector<4x256xf32>
    %24 = arith.addf %21, %3 : vector<4x256xf32>
    %25 = vector.shape_cast %22 : vector<4x256xf32> to vector<1x4x256xf32>
    %cst_7 = arith.constant dense<0.000000e+00> : vector<1xf32>
    %26 = vector.multi_reduction <add>, %25, %cst_7 [1, 2] : vector<1x4x256xf32> to vector<1xf32>
    %27 = vector.shape_cast %26 : vector<1xf32> to vector<1x1x1xf32>
    %28 = vector.extract %27[0, 0, 0] : f32 from vector<1x1x1xf32>
    %29 = vector.shape_cast %23 : vector<4x256xf32> to vector<1x4x256xf32>
    %cst_8 = arith.constant dense<0.000000e+00> : vector<1xf32>
    %30 = vector.multi_reduction <add>, %29, %cst_8 [1, 2] : vector<1x4x256xf32> to vector<1xf32>
    %31 = vector.shape_cast %30 : vector<1xf32> to vector<1x1x1xf32>
    %32 = vector.extract %31[0, 0, 0] : f32 from vector<1x1x1xf32>
    %33 = vector.shape_cast %24 : vector<4x256xf32> to vector<1x4x256xf32>
    %cst_9 = arith.constant dense<0.000000e+00> : vector<1xf32>
    %34 = vector.multi_reduction <add>, %33, %cst_9 [1, 2] : vector<1x4x256xf32> to vector<1xf32>
    %35 = vector.shape_cast %34 : vector<1xf32> to vector<1x1x1xf32>
    %36 = vector.extract %35[0, 0, 0] : f32 from vector<1x1x1xf32>
    %37 = tpu.iota {dimensions = array<i32: 1>} : vector<8x128xi32>
    %c0_i32 = arith.constant 0 : i32
    %38 = vector.broadcast %c0_i32 : i32 to vector<8x128xi32>
    %39 = arith.cmpi eq, %37, %38 : vector<8x128xi32>
    %c1_i32 = arith.constant 1 : i32
    %40 = vector.broadcast %c1_i32 : i32 to vector<8x128xi32>
    %41 = arith.cmpi eq, %37, %40 : vector<8x128xi32>
    %c2_i32 = arith.constant 2 : i32
    %42 = vector.broadcast %c2_i32 : i32 to vector<8x128xi32>
    %43 = arith.cmpi eq, %37, %42 : vector<8x128xi32>
    %cst_10 = arith.constant 0.000000e+00 : f32
    %44 = vector.broadcast %36 : f32 to vector<8x128xf32>
    %45 = vector.broadcast %cst_10 : f32 to vector<8x128xf32>
    %46 = arith.select %43, %44, %45 : vector<8x128xi1>, vector<8x128xf32>
    %47 = vector.broadcast %32 : f32 to vector<8x128xf32>
    %48 = arith.select %41, %47, %46 : vector<8x128xi1>, vector<8x128xf32>
    %49 = vector.broadcast %28 : f32 to vector<8x128xf32>
    %50 = arith.select %39, %49, %48 : vector<8x128xi1>, vector<8x128xf32>
    %c0_11 = arith.constant 0 : index
    %c0_12 = arith.constant 0 : index
    %c0_13 = arith.constant 0 : index
    %c0_14 = arith.constant 0 : index
    %51 = vector.load %arg4[%c0_11, %c0_12, %c0_13, %c0_14] : memref<1x1x8x128xf32, #tpu.memory_space<vmem>>, vector<1x1x8x128xf32>
    %52 = vector.shape_cast %51 : vector<1x1x8x128xf32> to vector<8x128xf32>
    %53 = vector.shape_cast %50 : vector<8x128xf32> to vector<1x1x8x128xf32>
    tpu.vector_store %arg4[%c0_11, %c0_12, %c0_13, %c0_14], %53 {strides = array<i32>} : memref<1x1x8x128xf32, #tpu.memory_space<vmem>>, vector<1x1x8x128xf32>,
    return
  }
  func.func @transform_0(%arg0: i32, %arg1: i32) -> (i32, i32, i32) {
    %c0_i32 = arith.constant 0 : i32
    %c0_i32_0 = arith.constant 0 : i32
    return %arg0, %c0_i32, %arg1 : i32, i32, i32
  }
  func.func @transform_1(%arg0: i32, %arg1: i32) -> (i32, i32, i32) {
    %c0_i32 = arith.constant 0 : i32
    %c0_i32_0 = arith.constant 0 : i32
    return %arg0, %c0_i32, %arg1 : i32, i32, i32
  }
  func.func @transform_2(%arg0: i32, %arg1: i32) -> (i32, i32, i32, i32) {
    %c0_i32 = arith.constant 0 : i32
    %c0_i32_0 = arith.constant 0 : i32
    %c0_i32_1 = arith.constant 0 : i32
    return %arg0, %arg1, %c0_i32, %c0_i32_0 : i32, i32, i32, i32
  }
}

</mosaic_0001>

<bundles_post_ra>
// kernel: tpu_custom_call.1
= control target key start
LH: loop header
LB: loop body
LE: loop exit
PB: predicated region body
PF: predicated region fallthrough
CT: control target
= control target key end

     0   :  { %7 = vsyncpa [#allocation3], 0  ;;  %s989_s0 = inlined_call_operand.hbm [shape: f32[2,4,256], index: 0, kind: input, shape index: {}]   ;;  %s990_s1 = inlined_call_operand.hbm [shape: f32[2,4,256], index: 1, kind: input, shape index: {}]   ;;  %s991_s2 = inlined_call_operand.hbm [shape: f32[2,1,8,128], index: 2, kind: output, shape index: {}]  }
   0x1   :  { %9 = vsyncpa [#allocation3 + $0x1], 0 }
   0x2   :  { %10 = vsyncpa [#allocation6], 0 }
   0x3   :  { %12 = vsyncpa [#allocation6 + $0x1], 0 }
   0x4   :  { %13 = vsyncpa [#allocation4], 0 }
   0x5   :  { %15 = vsyncpa [#allocation4 + $0x1], 0  ;;  %s745_s9 = smov 0   ;;  %s747_s10 = smov 0  }
   0x6   :  { %s749_s11 = smov 0   ;;  %s751_s12 = smov 0  }
   0x7   :  { %s753_s13 = smov 0   ;;  %s755_s14 = smov 0  }
   0x8 LB: > { %s473_s15 = sadd.s32 4294967295, %s725_s14   ;;  %s474_s16 = sadd.s32 4294967294, %s725_s14   ;;  %s725_s14 = sphi %s755_s14, %s21_s14   ;;  %s721_s13 = sphi %s753_s13, %s1011_s13   ;;  %s717_s12 = sphi %s751_s12, %s1010_s12   ;;  %s713_s11 = sphi %s749_s11, %s1009_s11   ;;  %s709_s10 = sphi %s747_s10, %s1008_s10   ;;  %s705_s9 = sphi %s745_s9, %s1007_s9  }
   0x9   : > { %s33_s17 = sadd.s32 1, %s721_s13  ;;  %s42_s18 = sadd.s32 1, %s713_s11 }
   0xa   : > { %p35_p0 = scmp.ge.s32.totalorder %s33_s17, 2  ;;  %p49_p1 = scmp.ne.s32.totalorder %s713_s11, %s709_s10 }
   0xb   : > { %p50_p2 = scmp.eq.s32.totalorder %s725_s14, 0  ;;  %p55_p3 = scmp.ne.s32.totalorder %s709_s10, %s705_s9 }
   0xc   : > { %s1013_s17 = smov (%p35_p0, %s33_s17), 0  ;;  %p56_p5 = scmp.eq.s32.totalorder %s473_s15, 0 }
   0xd   : > { %p786_p4 = por %p50_p2, %p49_p1  ;;  %s37_s20 = ssub.s32 %s721_s13, %s1013_s17 }
   0xe   : > { %p109_p6 = scmp.eq.s32.totalorder %s473_s15, 1  ;;  %p40_p7 = scmp.eq.s32.totalorder %s37_s20, 0 }
   0xf   : > { %p792_p8 = por %p56_p5, %p55_p3  ;;  %p115_p10 = scmp.eq.s32.totalorder %s474_s16, 1 }
  0x10   : > { %p796_p9 = por %p109_p6, %p49_p1  ;;  %p516_p13 = scmp.lt.s32.totalorder %s725_s14, 2 }
  0x11   : > { %s995_s21 = scalar_select %p792_p8, 1, 0 }
  0x12   : > { %s996_s22 = scalar_select %p796_p9, 1, 0 }
  0x13   : > { %s801_s23 = scalar_select %p40_p7, %s713_s11, %s42_s18  }
  0x14   : > { %p803_p11 = por %p115_p10, %p55_p3  ;;  %s810_s25 = sand.u32 1, %s713_s11  }
  0x15   : > { %s477_s26 = sshll.u32 %s810_s25, 3  ;;  %s491_s27 = sshll.u32 %s721_s13, 7 }
  0x16   : > { %s997_s24 = scalar_select %p803_p11, 1, 0 }
  0x17   : > { %s819_s30 = scalar_lea.hbm %s989_s0, %s491_s27  ;;  %s139_s3 = scalar_lea.vmem [#allocation2], %s477_s26 }
  0x18   : > { %s149_s4 = sshll.u32 %s139_s3, 4  ;;  %p827_p0 = pnand %p516_p13, %p786_p4  ;;  %s823_s4 = int_to_ptr.vmem [resolvable:$true] %s149_s4 }
  0x19   : > { %s136_s6 = scalar_lea.sflag [#allocation3], %s810_s25  ;;  %s579_s7 = scalar_lea.hbm %s819_s30, 128 }
  0x1a   : > { %p580_p3 = scmp.ne.s32.totalorder %s819_s30, %s579_s7  ;;  %p581_p5 = pneg %p827_p0 }
  0x1b   : > { %s584_s16 = scalar_lea.hbm %s989_s0, 256  ;;  %p585_p4 = scmp.lt.u32.totalorder %s819_s30, %s989_s0 }
  0x1c   : > { %p582_p6 = pnand %p581_p5, %p580_p3  ;;  %p586_p10 = scmp.lt.u32.totalorder %s584_s16, %s579_s7 }
  0x1d   : > { %p588_p12 = scmp.lt.u32.totalorder %s579_s7, %s819_s30 }
  0x1e   : > { %p583_p7 = pneg %p582_p6  ;;  %p587_p13 = por %p586_p10, %p585_p4 }
  0x20   : > { %p589_p1 = por %p588_p12, %p587_p13 }
  0x22   : > { %p590_p2 = pnand %p589_p1, %p583_p7 }
  0x24   : > { %593 = shalt.err (!%p590_p2)
}
  0x25   : > { %s594_s20 = scalar_lea.vmem %s823_s4, 128  ;;  %s727_s28 = smov [#allocation2]  }
  0x26   : > { %p595_p3 = scmp.ne.s32.totalorder %s823_s4, %s594_s20  ;;  %s599_s29 = sshll.u32 %s727_s28, 4  ;;  %s600_s29 = int_to_ptr.vmem [resolvable:$false] %s599_s29 }
  0x27   : > { %s601_s3 = scalar_lea.vmem %s600_s29, 256  ;;  %p602_p9 = scmp.lt.s32.totalorder %s823_s4, %s600_s29 }
  0x28   : > { %p597_p6 = pnand %p595_p3, %p581_p5  ;;  %p603_p4 = scmp.lt.s32.totalorder %s601_s3, %s594_s20 }
  0x2a   : > { %p598_p11 = pneg %p597_p6  ;;  %p604_p10 = por %p603_p4, %p602_p9 }
  0x2c   : > { %p605_p12 = pnand %p604_p10, %p598_p11 }
  0x2e   : > { %608 = shalt.err (!%p605_p12)
}
  0x2f   : > { %508 = dma.hbm_to_vmem [thread:$0]  (!%p827_p0), %s819_s30, 128, %s823_s4, %s136_s6  }
  0x30   : > { %p999_p1 = scmp.lt.s32.totalorder %s725_s14, 3  ;;  %p1000_p2 = scmp.ge.s32.totalorder %s725_s14, 1 }
  0x31   : > { %s872_s16 = scalar_lea.hbm %s990_s1, %s491_s27  ;;  %s160_s18 = scalar_lea.vmem [#allocation5], %s477_s26 }
  0x32   : > { %p863_p7 = pnand %p1000_p2, %p999_p1  ;;  %s170_s19 = sshll.u32 %s160_s18, 4  ;;  %s171_s19 = int_to_ptr.vmem [resolvable:$true] %s170_s19 }
  0x33   : > { %s157_s30 = scalar_lea.sflag [#allocation6], %s810_s25  ;;  %s609_s4 = scalar_lea.hbm %s872_s16, 128 }
  0x34   : > { %s1001_s7 = scalar_select %p863_p7, 1, 0 }
  0x35   : > { %p610_p9 = scmp.ne.s32.totalorder %s872_s16, %s609_s4  ;;  %s614_s27 = scalar_lea.hbm %s990_s1, 256 }
  0x36   : > { %p615_p3 = scmp.lt.u32.totalorder %s872_s16, %s990_s1  ;;  %p616_p6 = scmp.lt.u32.totalorder %s614_s27, %s609_s4 }
  0x37   : > { %p612_p11 = pnand %p610_p9, %p581_p5  ;;  %p618_p10 = scmp.lt.u32.totalorder %s609_s4, %s872_s16 }
  0x38   : > { %p617_p4 = por %p616_p6, %p615_p3 }
  0x39   : > { %p613_p13 = pneg %p612_p11 }
  0x3a   : > { %p619_p12 = por %p618_p10, %p617_p4 }
  0x3c   : > { %p620_p1 = pnand %p619_p12, %p613_p13 }
  0x3e   : > { %623 = shalt.err (!%p620_p1)
}
  0x3f   : > { %s624_s25 = scalar_lea.vmem %s171_s19, 128  ;;  %s728_s26 = smov [#allocation5]  }
  0x40   : > { %p625_p2 = scmp.ne.s32.totalorder %s171_s19, %s624_s25  ;;  %s629_s3 = sshll.u32 %s728_s26, 4  ;;  %s630_s3 = int_to_ptr.vmem [resolvable:$false] %s629_s3 }
  0x41   : > { %s631_s8 = scalar_lea.vmem %s630_s3, 256  ;;  %p632_p8 = scmp.lt.s32.totalorder %s171_s19, %s630_s3 }
  0x42   : > { %p627_p9 = pnand %p625_p2, %p581_p5  ;;  %p633_p7 = scmp.lt.s32.totalorder %s631_s8, %s624_s25 }
  0x44   : > { %p628_p11 = pneg %p627_p9  ;;  %p634_p3 = por %p633_p7, %p632_p8 }
  0x46   : > { %p635_p6 = pnand %p634_p3, %p628_p11 }
  0x48   : > { %638 = shalt.err (!%p635_p6)
}
  0x49   : > { %511 = dma.hbm_to_vmem [thread:$0]  (!%p827_p0), %s872_s16, 128, %s171_s19, %s157_s30  }
  0x4a   : > { %p1002_p13 = scmp.ne.s32.totalorder %s1001_s7, 0 }
  0x4b   : > { %s899_s15 = sand.u32 (!%p1002_p13), 1, %s709_s10   ;;  %p1003_p8 = scmp.ne.s32.totalorder (!%p1002_p13), %s995_s21, 0 }
  0x4c   : > { %179 = sbr.rel (%p1002_p13) target bundleno = 387 (0x183), region = 28  ;;  %s902_s18 = sshll.u32 (!%p1002_p13), %s899_s15, 3 }
  0x4d   : > { %s182_s4 = scalar_lea.sflag (!%p1002_p13), [#allocation3], %s899_s15  ;;  %s185_s6 = scalar_lea.vmem (!%p1002_p13), [#allocation2], %s902_s18 }
  0x53   : > { %692 = dma.done.wait (%p1003_p8), %s182_s4, 128  }
  0x54   : > { %694 = vsyncadd (%p1003_p8), %s182_s4, 4294967168  ;;  %s191_s5 = scalar_lea.sflag [#allocation6], %s899_s15  ;;  %s194_s7 = scalar_lea.vmem [#allocation5], %s902_s18 }
  0x55   : > { %696 = dma.done.wait (%p1003_p8), %s191_s5, 128  }
  0x56   : > { %698 = vsyncadd (%p1003_p8), %s191_s5, 4294967168  ;;  %vm227_vm0 = vcmask 1043456   ;;  %v916_v0 = vld [vmem:[%s185_s6] sm:$0xff]  ;;  %v223_v43 = vld [vmem:[%s194_s7] sm:$0xff]  ;;  %s488_s19 = sshll.u32 %s717_s12, 7  ;;  %s219_s20 = scalar_lea.vmem [#allocation7], %s902_s18 }
  0x57   : > { %v225_v1 = vcombine.high %v916_v0, %v916_v0  ;;  %v228_v2 = vsel %vm227_vm0, %v916_v0, -inf  ;;  %s365_s27 = sshll.u32 %s219_s20, 4  ;;  %s940_s25 = scalar_lea.hbm %s991_s2, %s488_s19  ;;  %s942_s27 = int_to_ptr.vmem [resolvable:$true] %s365_s27 }
  0x58   : > { %v229_v3 = vrot.slane %v228_v2, 4  ;;  %s351_s12 = scalar_lea.sflag [#allocation4], %s899_s15  ;;  %s639_s26 = scalar_lea.vmem %s942_s27, 128 }
  0x59   : > { %v235_v4 = vsel %vm227_vm0, %v225_v1, -inf  ;;  %p640_p0 = scmp.ne.s32.totalorder %s942_s27, %s639_s26  ;;  %p1004_p5 = scmp.ne.s32.totalorder %s996_s22, 0 }
  0x5a   : > { %v230_v5 = vmax.f32 %v228_v2, %v229_v3  ;;  %v236_v6 = vrot.slane %v235_v4, 4  ;;  %s729_s3 = smov [#allocation7]  }
  0x5b   : > { %p641_p7 = pnand %p640_p0, %p1004_p5  ;;  %s643_s8 = sshll.u32 %s729_s3, 4  ;;  %s644_s8 = int_to_ptr.vmem [resolvable:$false] %s643_s8 }
  0x5c   : > { %v231_v7 = vrot.slane %v230_v5, 2  ;;  %v237_v8 = vmax.f32 %v235_v4, %v236_v6  ;;  %s645_s18 = scalar_lea.vmem %s644_s8, 256  ;;  %p646_p10 = scmp.lt.s32.totalorder %s942_s27, %s644_s8 }
  0x5d   : > { %p642_p4 = pneg %p641_p7  ;;  %p647_p12 = scmp.lt.s32.totalorder %s645_s18, %s639_s26 }
  0x5e   : > { %v232_v9 = vmax.f32 %v230_v5, %v231_v7  ;;  %v238_v10 = vrot.slane %v237_v8, 2 }
  0x5f   : > { %p648_p1 = por %p647_p12, %p646_p10 }
  0x60   : > { %v233_v11 = vrot.slane %v232_v9, 1  ;;  %v239_v12 = vmax.f32 %v237_v8, %v238_v10 }
  0x61   : > { %p649_p2 = pnand %p648_p1, %p642_p4 }
  0x62   : > { %v234_v13 = vmax.f32 %v232_v9, %v233_v11  ;;  %v240_v14 = vrot.slane %v239_v12, 1 }
  0x64   : > { %v241_v15 = vmax.f32 %v239_v12, %v240_v14  ;;  %v277_v16 = vsub.f32 0.0, %v234_v13 }
  0x66   : > { %v244_v17 = vcombine.low %v234_v13, %v241_v15  ;;  %v278_v18 = vsub.f32 0.0, %v241_v15  ;;  %v279_v19 = vmul.f32 1.442695, %v277_v16 }
  0x68   : > { %v246_v20 = vsub.f32 %v916_v0, %v244_v17  ;;  %567 = vpow2.f32 %v279_v19  ;;  %v281_v21 = vmul.f32 1.442695, %v278_v18 }
  0x6a   : > { %v247_v22 = vmul.f32 1.442695, %v246_v20  ;;  %569 = vpow2.f32 %v281_v21 }
  0x6c   : > { %571 = vpow2.f32 %v247_v22 }
  0x72   : > { %v568_v23 = vpop.eup %567 }
  0x74   : > { %v570_v24 = vpop.eup %569 }
  0x75   : > { %v285_v25 = vcombine.low %v568_v23, %v570_v24 }
  0x76   : > { %v572_v26 = vpop.eup %571 }
  0x77   : > { %v287_v27 = vadd.f32 %v572_v26, %v285_v25  ;;  %v250_v28 = vcombine.high %v572_v26, %v572_v26  ;;  %v252_v29 = vsel %vm227_vm0, %v572_v26, 0.0 }
  0x78   : > { %v253_v30 = vrot.slane %v252_v29, 4 }
  0x79   : > { %573 = vrcp.f32 %v287_v27  ;;  %v259_v31 = vsel %vm227_vm0, %v250_v28, 0.0 }
  0x7a   : > { %v254_v32 = vadd.f32 %v253_v30, %v252_v29  ;;  %v260_v33 = vrot.slane %v259_v31, 4 }
  0x7c   : > { %v255_v34 = vrot.slane %v254_v32, 2  ;;  %v261_v35 = vadd.f32 %v260_v33, %v259_v31 }
  0x7e   : > { %v256_v36 = vadd.f32 %v255_v34, %v254_v32  ;;  %v262_v37 = vrot.slane %v261_v35, 2 }
  0x80   : > { %v257_v38 = vrot.slane %v256_v36, 1  ;;  %v263_v39 = vadd.f32 %v262_v37, %v261_v35 }
  0x82   : > { %v258_v40 = vadd.f32 %v257_v38, %v256_v36  ;;  %v264_v41 = vrot.slane %v263_v39, 1 }
  0x83   : > { %v574_v42 = vpop.eup %573 }
  0x84   : > { %v289_v44 = vmul.f32 %v574_v42, %v572_v26  ;;  %v265_v45 = vadd.f32 %v264_v41, %v263_v39  ;;  %575 = vlog2.f32 %v258_v40  ;;  %v338_v26 = vlaneseq }
  0x86   : > { %v292_v46 = vadd.f32 %v289_v44, %v223_v43  ;;  %577 = vlog2.f32 %v265_v45  ;;  %v291_v58 = vmul.f32 %v289_v44, %v223_v43  ;;  %v339_v27 = vand.u32 127, %v338_v26 }
  0x88   : > { %v324_v47 = vcombine.high %v292_v46, %v292_v46  ;;  %v326_v48 = vsel %vm227_vm0, %v292_v46, 0.0  ;;  %v309_v61 = vcombine.high %v291_v58, %v291_v58  ;;  %v311_v2 = vsel %vm227_vm0, %v291_v58, 0.0 }
  0x89   : > { %vm342_vm1 = vcmp.eq.s32.totalorder %v339_v27, 2  ;;  %vm341_vm2 = vcmp.eq.s32.totalorder %v339_v27, 1  ;;  %vm340_vm3 = vcmp.eq.s32.totalorder %v339_v27, 0 }
  0x8a   : > { %v327_v49 = vsel %vm227_vm0, %v324_v47, 0.0  ;;  %v312_v3 = vsel %vm227_vm0, %v309_v61, 0.0 }
  0x8b   : > { %v328_v50 = vadd.f32 %v327_v49, %v326_v48  ;;  %v313_v5 = vadd.f32 %v312_v3, %v311_v2 }
  0x8d   : > { %329 = vadd.xlane.f32.xlu1 %v328_v50 }
  0x8e   : > { %v576_v51 = vpop.eup %575 }
  0x8f   : > { %v267_v52 = vmul.f32 0.6931472, %v576_v51 }
  0x90   : > { %v578_v53 = vpop.eup %577 }
  0x91   : > { %v269_v54 = vmul.f32 0.6931472, %v578_v53  ;;  %v270_v55 = vadd.f32 %v267_v52, %v234_v13 }
  0x93   : > { %v271_v56 = vadd.f32 %v269_v54, %v241_v15 }
  0x95   : > { %v274_v57 = vcombine.low %v270_v55, %v271_v56 }
  0x97   : > { %v276_v59 = vsub.f32 %v916_v0, %v274_v57 }
  0x99   : > { %v290_v60 = vmul.f32 %v276_v59, %v223_v43 }
  0x9b   : > { %v294_v62 = vcombine.high %v290_v60, %v290_v60  ;;  %v296_v63 = vsel %vm227_vm0, %v290_v60, 0.0 }
  0x9d   : > { %v297_v1 = vsel %vm227_vm0, %v294_v62, 0.0 }
  0x9e   : > { %v298_v4 = vadd.f32 %v297_v1, %v296_v63 }
  0xa0   : > { %299 = vadd.xlane.f32.xlu0 %v298_v4 }
  0xa4   : > { %314 = vadd.xlane.f32.xlu0 %v313_v5 }
 0x11a   : > { %v330_v6 = vpop.xlane.xlu1 %329 }
 0x11b   : > { %v331_v7 = vrot.slane %v330_v6, 4 }
 0x11d   : > { %v332_v8 = vadd.f32 %v331_v7, %v330_v6 }
 0x11f   : > { %v333_v11 = vrot.slane %v332_v8, 2 }
 0x121   : > { %v334_v17 = vadd.f32 %v333_v11, %v332_v8 }
 0x123   : > { %v335_v22 = vrot.slane %v334_v17, 1 }
 0x125   : > { %v336_v25 = vadd.f32 %v335_v22, %v334_v17 }
 0x12d   : > { %v300_v9 = vpop.xlane.xlu0 %299 }
 0x12e   : > { %v301_v0 = vrot.slane %v300_v9, 4 }
 0x130   : > { %v302_v10 = vadd.f32 %v301_v0, %v300_v9 }
 0x131   : > { %v315_v12 = vpop.xlane.xlu0 %314 }
 0x132   : > { %v303_v13 = vrot.slane %v302_v10, 2  ;;  %v316_v14 = vrot.slane %v315_v12, 4 }
 0x134   : > { %v317_v15 = vadd.f32 %v316_v14, %v315_v12  ;;  %v304_v16 = vadd.f32 %v303_v13, %v302_v10 }
 0x136   : > { %v318_v18 = vrot.slane %v317_v15, 2  ;;  %v305_v19 = vrot.slane %v304_v16, 1 }
 0x138   : > { %v319_v20 = vadd.f32 %v318_v18, %v317_v15  ;;  %v306_v21 = vadd.f32 %v305_v19, %v304_v16 }
 0x13a   : > { %493 = vpush %v306_v21  ;;  %v320_v23 = vrot.slane %v319_v20, 1 }
 0x13c   : > { %v321_v24 = vadd.f32 %v320_v23, %v319_v20 }
 0x13e   : > { %495 = vpush %v321_v24 }
 0x13f   : > { %497 = vpush %v336_v25 }
 0x16b   : > { %s494_s21 = spop %493 }
 0x16c   : > { %v347_v31 = vstv %s494_s21 }
 0x16f   : > { %s496_s16 = spop %495 }
 0x170   : > { %v345_v28 = vstv %s496_s16  ;;  %s498_s30 = spop %497 }
 0x171   : > { %v343_v29 = vstv %s498_s30 }
 0x172   : > { %v344_v30 = vsel %vm342_vm1, %v343_v29, 0.0 }
 0x173   : > { %v346_v32 = vsel %vm341_vm2, %v345_v28, %v344_v30 }
 0x174   : > { %v348_v33 = vsel %vm340_vm3, %v347_v31, %v346_v32 }
 0x175   : > { %349 = vst [vmem:[%s219_s20] sm:$0xff] %v348_v33 }
 0x176   : > { %652 = shalt.err (!%p649_p2)
}
 0x177   : > { %s653_s15 = scalar_lea.hbm %s940_s25, 128  ;;  %s657_s5 = scalar_lea.hbm %s991_s2, 256 }
 0x178   : > { %p654_p9 = scmp.ne.s32.totalorder %s940_s25, %s653_s15  ;;  %p658_p6 = scmp.lt.u32.totalorder %s940_s25, %s991_s2 }
 0x179   : > { %p659_p13 = scmp.lt.u32.totalorder %s657_s5, %s653_s15  ;;  %p661_p0 = scmp.lt.u32.totalorder %s653_s15, %s940_s25 }
 0x17a   : > { %p655_p11 = pnand %p654_p9, %p1004_p5 }
 0x17b   : > { %p660_p8 = por %p659_p13, %p658_p6 }
 0x17c   : > { %p656_p3 = pneg %p655_p11 }
 0x17d   : > { %p662_p7 = por %p661_p0, %p660_p8 }
 0x17f   : > { %p663_p4 = pnand %p662_p7, %p656_p3 }
 0x181   : > { %666 = shalt.err (!%p663_p4)
}
 0x182   : > { %503 = dma.vmem_to_hbm [thread:$0]  (%p1004_p5), %s942_s27, 128, %s940_s25, %s351_s12  }
 0x183 PF: > { %s377_s16 = sand.u32 1, %s705_s9   ;;  %p1005_p10 = scmp.ne.s32.totalorder %s997_s24, 0 }
 0x184   : > { %p1006_p12 = scmp.ge.s32.totalorder %s725_s14, 2  ;;  %s378_s19 = scalar_lea.sflag [#allocation4], %s377_s16 }
 0x186   : > { %p513_p1 = pnand %p1006_p12, %p1005_p10 }
 0x188   : > { %700 = dma.done.wait (!%p513_p1), %s378_s19, 128  }
 0x189   : > { %702 = vsyncadd (!%p513_p1), %s378_s19, 4294967168  ;;  %s21_s14 = sadd.s32 1, %s725_s14   ;;  %s1007_s9 = smov %s709_s10 }
 0x18a   : > { %p18_p2 = scmp.ge.s32.totalorder %s21_s14, 4   ;;  %s1008_s10 = smov %s713_s11 }
 0x18b   : > { %s1009_s11 = smov %s801_s23  ;;  %s1010_s12 = smov %s721_s13 }
 0x18c   : > { %s1011_s13 = smov %s1013_s17  ;;  %20 = sbr.rel (!%p18_p2) target bundleno = 8 (0x8), region = 86 }
 0x193   :  { %383 = vsyncpa [#allocation3], 1 }
 0x194   :  { %385 = vsyncpa [#allocation3 + $0x1], 1 }
 0x195   :  { %386 = vsyncpa [#allocation6], 1 }
 0x196   :  { %388 = vsyncpa [#allocation6 + $0x1], 1 }
 0x197   :  { %389 = vsyncpa [#allocation4], 1 }
 0x198   :  { %391 = vsyncpa [#allocation4 + $0x1], 1 }

</bundles_post_ra>
